<compile_context>
chip_gen: v5e
topology: v5e:2x2
jax: 0.10.0
libtpu: 0.0.40
codegen_flags: <defaults>
</compile_context>

<pallas_src>
import jax
import jax.numpy as jnp
from jax.experimental import pallas as pl
from jax.experimental.pallas import tpu as pltpu

_LANE = 128
_SUBLANE = 8


def _round_up(n, m):
    return -(-n // m) * m


def _device_kind():
    try:
        return jax.devices()[0].device_kind.lower()
    except Exception:
        return ""


def _vmem_capacity_bytes():
    try:
        info = pltpu.get_tpu_info()
        cap = int(getattr(info, "vmem_capacity_bytes", 0) or 0)
        if cap > 0:
            return cap
    except Exception:
        pass
    # Fallback heuristic: v7x has 64 MiB VMEM per TC, v5e/v6e have 128 MiB.
    return (64 << 20) if "v7" in _device_kind() else (128 << 20)


def _elementwise_dtype():
    kind = _device_kind()
    # v5e and older have no bf16 VALU: keep the bias/ReLU chain in f32 there.
    for old in ("v2", "v3", "v4", "v5"):
        if old in kind:
            return jnp.float32
    return jnp.bfloat16


def _make_mlp_kernel(ew_dtype):
    """Fused (Linear->ReLU) x3 -> Linear, elementwise chain in ew_dtype."""

    def kernel(x_ref,
               w0_ref, b0_ref,
               w1_ref, b1_ref,
               w2_ref, b2_ref,
               w3_ref, b3_ref,
               o_ref):
        cdt = w0_ref.dtype                                  # MXU compute dtype (bf16)
        x = x_ref[...].astype(cdt)

        h = jnp.dot(x, w0_ref[...], preferred_element_type=jnp.float32)
        h = jnp.maximum(h.astype(ew_dtype) + b0_ref[...], 0)   # ReLU (Dropout -> identity)

        h = jnp.dot(h.astype(cdt), w1_ref[...], preferred_element_type=jnp.float32)
        h = jnp.maximum(h.astype(ew_dtype) + b1_ref[...], 0)   # ReLU (Dropout -> identity)

        h = jnp.dot(h.astype(cdt), w2_ref[...], preferred_element_type=jnp.float32)
        h = jnp.maximum(h.astype(ew_dtype) + b2_ref[...], 0)   # ReLU

        # Final (h2 -> 1) layer folded directly into the lane-dense output row:
        #   out[0, b] = sum_k w3[0, k] * h[b, k] + b3
        out_row = jax.lax.dot_general(
            w3_ref[...], h.astype(cdt),
            dimension_numbers=(((1,), (1,)), ((), ())),
            preferred_element_type=jnp.float32) + b3_ref[...]
        o_ref[...] = out_row.astype(o_ref.dtype)

    return kernel


def _default_batch_tile(batch, vmem_cap_bytes):
    if batch < 256:
        return batch                       # single tile; block == full array is legal
    if vmem_cap_bytes >= (96 << 20):       # v5e / v6e (128 MiB VMEM)
        candidates = (16384, 8192, 4096, 2048, 1024, 512, 256, 128)
    else:                                  # v7x (64 MiB VMEM)
        candidates = (8192, 4096, 2048, 1024, 512, 256, 128)
    # Guarantee >= 2 grid tiles so the "parallel" batch axis can split across the
    # two TensorCores on v7x and DMA/compute pipelining actually engages.
    half = max(128, (batch // 2) // 128 * 128)
    for t in candidates:
        if t <= half:
            return t
    return 128


def price_regressor_forward(x, params, *, batch_tile=None,
                            compute_dtype=jnp.bfloat16,
                            elementwise_dtype=None):
    """Fused MLP forward.  x: (B, inputs), any float dtype -> (B, 1) float32."""
    B, D = x.shape
    (w0, b0), (w1, b1), (w2, b2), (w3, b3) = params
    h0, h1, h2 = w0.shape[1], w1.shape[1], w2.shape[1]
    assert w3.shape == (h2, 1)

    vmem_cap = _vmem_capacity_bytes()
    if elementwise_dtype is None:
        elementwise_dtype = _elementwise_dtype()
    ew = jnp.dtype(elementwise_dtype)
    cd = jnp.dtype(compute_dtype)

    if batch_tile is None:
        batch_tile = _default_batch_tile(B, vmem_cap)
    n_tiles = -(-B // batch_tile)
    B_pad = n_tiles * batch_tile
    # (8,128) layout rules: x block (batch_tile, D), out block (1, batch_tile).
    assert batch_tile == B_pad or batch_tile % 128 == 0, \
        "multi-tile runs need batch_tile to be a multiple of 128"
    if B_pad != B:
        x = jnp.pad(x, ((0, B_pad - B), (0, 0)))        # zero-pad; sliced off below

    # One-time (tiny) parameter prep: bf16 hidden weights, elementwise-dtype biases,
    # final layer stored as a (1, h2) bf16 row + (1, 1) f32 bias.
    w0c, w1c, w2c = (w.astype(cd) for w in (w0, w1, w2))
    b0c, b1c, b2c = (b.reshape(1, -1).astype(ew) for b in (b0, b1, b2))
    w3r = w3.reshape(1, h2).astype(cd)
    b3r = b3.reshape(1, 1).astype(jnp.float32)

    def param_spec(shape):
        # Constant index map -> parameter stays resident in VMEM across grid steps.
        return pl.BlockSpec(shape, lambda i: (0, 0))

    # Advisory cost estimate (per-step-overhead / VALU bound; x traffic is small).
    flops = 2 * B_pad * (D * h0 + h0 * h1 + h1 * h2 + h2)
    param_arrays = (w0c, b0c, w1c, b1c, w2c, b2c, w3r, b3r)
    param_bytes = sum(int(a.size) * a.dtype.itemsize for a in param_arrays)
    bytes_accessed = B_pad * D * x.dtype.itemsize + param_bytes + B_pad * 4
    cost = pl.CostEstimate(flops=flops, transcendentals=0,
                           bytes_accessed=bytes_accessed)

    # Lane-padding-aware VMEM estimate:
    #   double-buffered x tile + resident (padded) params x2 + lane-padded activation
    #   chain (h0/h1/h2 each occupy full 128-lane tiles) + output slab double-buffer.
    def padded_bytes(shape, itemsize):
        r, c = shape
        return _round_up(r, _SUBLANE) * _round_up(c, _LANE) * itemsize

    x_buf = 2 * padded_bytes((batch_tile, D), x.dtype.itemsize)
    p_buf = 2 * sum(padded_bytes(a.shape, a.dtype.itemsize) for a in param_arrays)
    act_buf = sum(padded_bytes((batch_tile, h), 4) for h in (h0, h1, h2))
    out_buf = 2 * padded_bytes((1, batch_tile), 4)
    vmem_est = x_buf + p_buf + act_buf + out_buf

    # Generation-aware cap: tight on v7x (64 MiB physical), roomy on v5e/v6e (128 MiB).
    cap = (40 << 20) if vmem_cap <= (64 << 20) else (96 << 20)
    vmem_limit = int(min(max(2 * vmem_est, 32 << 20), cap))

    out_row = pl.pallas_call(
        _make_mlp_kernel(ew),
        out_shape=jax.ShapeDtypeStruct((1, B_pad), jnp.float32),
        grid_spec=pltpu.PrefetchScalarGridSpec(
            num_scalar_prefetch=0,
            grid=(n_tiles,),
            in_specs=[
                pl.BlockSpec((batch_tile, D), lambda i: (i, 0)),   # x tile (native dtype)
                param_spec((D, h0)),  param_spec((1, h0)),
                param_spec((h0, h1)), param_spec((1, h1)),
                param_spec((h1, h2)), param_spec((1, h2)),
                param_spec((1, h2)),  param_spec((1, 1)),
            ],
            out_specs=pl.BlockSpec((1, batch_tile), lambda i: (0, i)),
        ),
        compiler_params=pltpu.CompilerParams(
            dimension_semantics=("parallel",),
            vmem_limit_bytes=vmem_limit),
        cost_estimate=cost,
    )(x, w0c, b0c, w1c, b1c, w2c, b2c, w3r, b3r)

    # (1, B_pad) lane-dense slab -> (B, 1) column (matches nn.Linear output).
    return out_row.reshape(B_pad, 1)[:B]


def init_params(key, inputs, hidden):
    """Deterministic init. Weights stored as (in, out); biases as (1, out)."""
    assert len(hidden) == 3
    dims = [inputs, hidden[0], hidden[1], hidden[2], 1]
    params = []
    for li in range(4):
        k_w, k_b, key = jax.random.split(key, 3)
        fan_in, fan_out = dims[li], dims[li + 1]
        bound = 1.0 / (fan_in ** 0.5)            # PyTorch nn.Linear default range
        w = jax.random.uniform(k_w, (fan_in, fan_out), jnp.float32, -bound, bound)
        b = jax.random.uniform(k_b, (1, fan_out), jnp.float32, -bound, bound)
        params.append((w, b))
    return params


def _reference_forward(x, params, compute_dtype=jnp.bfloat16, elementwise_dtype=None):
    """Pure-JAX reference with the same mixed-precision recipe as the kernel."""
    if elementwise_dtype is None:
        elementwise_dtype = _elementwise_dtype()
    ew = jnp.dtype(elementwise_dtype)
    cd = jnp.dtype(compute_dtype)
    (w0, b0), (w1, b1), (w2, b2), (w3, b3) = params
    h = x
    for (w, b) in ((w0, b0), (w1, b1), (w2, b2)):
        h = jnp.dot(h.astype(cd), w.astype(cd), preferred_element_type=jnp.float32)
        h = jnp.maximum(h.astype(ew) + b.reshape(1, -1).astype(ew), 0)
    out = jnp.dot(h.astype(cd), w3.reshape(-1, 1).astype(cd),
                  preferred_element_type=jnp.float32)
    return out + b3.reshape(1, 1).astype(jnp.float32)


if __name__ == "__main__":
    key = jax.random.PRNGKey(0)
    k_x1, k_x2, k_p = jax.random.split(key, 3)

    inputs, hidden = 32, [64, 32, 16]
    params = init_params(k_p, inputs, hidden)

    # Small single-tile case (block == full array).
    x_small = jax.random.normal(k_x1, (8, inputs), jnp.float32).astype(jnp.bfloat16)
    out_small = jax.block_until_ready(price_regressor_forward(x_small, params))
    ref_small = _reference_forward(x_small, params)
    assert out_small.shape == (8, 1)
    assert jnp.allclose(out_small, ref_small, atol=2e-2, rtol=2e-2), \
        "mismatch vs JAX reference (small)"

    # Multi-tile case (>=2 grid tiles) exercising the pipelined, lane-dense,
    # dual-TensorCore-capable path.
    x_big = jax.random.normal(k_x2, (256, inputs), jnp.float32).astype(jnp.bfloat16)
    out_big = jax.block_until_ready(price_regressor_forward(x_big, params))
    ref_big = _reference_forward(x_big, params)
    assert out_big.shape == (256, 1)
    assert jnp.allclose(out_big, ref_big, atol=2e-2, rtol=2e-2), \
        "mismatch vs JAX reference (tiled)"

    print("KERNEL_OK")
</pallas_src>

<mosaic_0001>
module attributes {stable_mosaic.version = 11 : i64} {
  func.func @kernel(%arg0: i32, %arg1: memref<8x32xbf16, #tpu.memory_space<vmem>>, %arg2: memref<32x64xbf16, #tpu.memory_space<vmem>>, %arg3: memref<1x64xbf16, #tpu.memory_space<vmem>>, %arg4: memref<64x32xbf16, #tpu.memory_space<vmem>>, %arg5: memref<1x32xbf16, #tpu.memory_space<vmem>>, %arg6: memref<32x16xbf16, #tpu.memory_space<vmem>>, %arg7: memref<1x16xbf16, #tpu.memory_space<vmem>>, %arg8: memref<1x16xbf16, #tpu.memory_space<vmem>>, %arg9: memref<1x1xf32, #tpu.memory_space<vmem>>, %arg10: memref<1x8xf32, #tpu.memory_space<vmem>>) attributes {dimension_semantics = [#tpu.dimension_semantics<parallel>], iteration_bounds = array<i64: 1>, scalar_prefetch = 0 : i64, scratch_operands = 0 : i64, tpu.core_type = #tpu.core_type<tc>, window_params = [{transform_indices = @transform_0, window_bounds = array<i64: 8, 32>}, {pipeline_mode = #tpu.pipeline_mode<synchronous>, transform_indices = @transform_1, window_bounds = array<i64: 32, 64>}, {pipeline_mode = #tpu.pipeline_mode<synchronous>, transform_indices = @transform_2, window_bounds = array<i64: 1, 64>}, {pipeline_mode = #tpu.pipeline_mode<synchronous>, transform_indices = @transform_3, window_bounds = array<i64: 64, 32>}, {pipeline_mode = #tpu.pipeline_mode<synchronous>, transform_indices = @transform_4, window_bounds = array<i64: 1, 32>}, {pipeline_mode = #tpu.pipeline_mode<synchronous>, transform_indices = @transform_5, window_bounds = array<i64: 32, 16>}, {pipeline_mode = #tpu.pipeline_mode<synchronous>, transform_indices = @transform_6, window_bounds = array<i64: 1, 16>}, {pipeline_mode = #tpu.pipeline_mode<synchronous>, transform_indices = @transform_7, window_bounds = array<i64: 1, 16>}, {pipeline_mode = #tpu.pipeline_mode<synchronous>, transform_indices = @transform_8, window_bounds = array<i64: 1, 1>}, {transform_indices = @transform_9, window_bounds = array<i64: 1, 8>}]} {
    %c0 = arith.constant 0 : index
    %c0_0 = arith.constant 0 : index
    %0 = vector.load %arg1[%c0, %c0_0] : memref<8x32xbf16, #tpu.memory_space<vmem>>, vector<8x32xbf16>
    %c0_1 = arith.constant 0 : index
    %c0_2 = arith.constant 0 : index
    %1 = vector.load %arg2[%c0_1, %c0_2] : memref<32x64xbf16, #tpu.memory_space<vmem>>, vector<32x64xbf16>
    %cst = arith.constant dense<0.000000e+00> : vector<8x64xf32>
    %2 = tpu.matmul %0, %1, %cst {dimension_numbers = #tpu.dot_dimension_numbers<[1], [0], [0], [1], [0, 0, 1, 1], [], []>} : vector<8x32xbf16>, vector<32x64xbf16>, vector<8x64xf32> -> vector<8x64xf32>
    %3 = arith.truncf %2 : vector<8x64xf32> to vector<8x64xbf16>
    %c0_3 = arith.constant 0 : index
    %c0_4 = arith.constant 0 : index
    %4 = vector.load %arg3[%c0_3, %c0_4] : memref<1x64xbf16, #tpu.memory_space<vmem>>, vector<1x64xbf16>
    %5 = vector.broadcast %4 : vector<1x64xbf16> to vector<8x64xbf16>
    %6 = arith.addf %3, %5 : vector<8x64xbf16>
    %cst_5 = arith.constant 0.000000e+00 : bf16
    %7 = vector.broadcast %cst_5 : bf16 to vector<8x64xbf16>
    %8 = arith.maximumf %6, %7 : vector<8x64xbf16>
    %c0_6 = arith.constant 0 : index
    %c0_7 = arith.constant 0 : index
    %9 = vector.load %arg4[%c0_6, %c0_7] : memref<64x32xbf16, #tpu.memory_space<vmem>>, vector<64x32xbf16>
    %cst_8 = arith.constant dense<0.000000e+00> : vector<8x32xf32>
    %10 = tpu.matmul %8, %9, %cst_8 {dimension_numbers = #tpu.dot_dimension_numbers<[1], [0], [0], [1], [0, 0, 1, 1], [], []>} : vector<8x64xbf16>, vector<64x32xbf16>, vector<8x32xf32> -> vector<8x32xf32>
    %11 = arith.truncf %10 : vector<8x32xf32> to vector<8x32xbf16>
    %c0_9 = arith.constant 0 : index
    %c0_10 = arith.constant 0 : index
    %12 = vector.load %arg5[%c0_9, %c0_10] : memref<1x32xbf16, #tpu.memory_space<vmem>>, vector<1x32xbf16>
    %13 = vector.broadcast %12 : vector<1x32xbf16> to vector<8x32xbf16>
    %14 = arith.addf %11, %13 : vector<8x32xbf16>
    %cst_11 = arith.constant 0.000000e+00 : bf16
    %15 = vector.broadcast %cst_11 : bf16 to vector<8x32xbf16>
    %16 = arith.maximumf %14, %15 : vector<8x32xbf16>
    %c0_12 = arith.constant 0 : index
    %c0_13 = arith.constant 0 : index
    %17 = vector.load %arg6[%c0_12, %c0_13] : memref<32x16xbf16, #tpu.memory_space<vmem>>, vector<32x16xbf16>
    %cst_14 = arith.constant dense<0.000000e+00> : vector<8x16xf32>
    %18 = tpu.matmul %16, %17, %cst_14 {dimension_numbers = #tpu.dot_dimension_numbers<[1], [0], [0], [1], [0, 0, 1, 1], [], []>} : vector<8x32xbf16>, vector<32x16xbf16>, vector<8x16xf32> -> vector<8x16xf32>
    %19 = arith.truncf %18 : vector<8x16xf32> to vector<8x16xbf16>
    %c0_15 = arith.constant 0 : index
    %c0_16 = arith.constant 0 : index
    %20 = vector.load %arg7[%c0_15, %c0_16] : memref<1x16xbf16, #tpu.memory_space<vmem>>, vector<1x16xbf16>
    %21 = vector.broadcast %20 : vector<1x16xbf16> to vector<8x16xbf16>
    %22 = arith.addf %19, %21 : vector<8x16xbf16>
    %cst_17 = arith.constant 0.000000e+00 : bf16
    %23 = vector.broadcast %cst_17 : bf16 to vector<8x16xbf16>
    %24 = arith.maximumf %22, %23 : vector<8x16xbf16>
    %c0_18 = arith.constant 0 : index
    %c0_19 = arith.constant 0 : index
    %25 = vector.load %arg8[%c0_18, %c0_19] : memref<1x16xbf16, #tpu.memory_space<vmem>>, vector<1x16xbf16>
    %cst_20 = arith.constant dense<0.000000e+00> : vector<1x8xf32>
    %26 = tpu.matmul %25, %24, %cst_20 {dimension_numbers = #tpu.dot_dimension_numbers<[1], [1], [0], [0], [0, 0, 1, 0], [], []>} : vector<1x16xbf16>, vector<8x16xbf16>, vector<1x8xf32> -> vector<1x8xf32>
    %c0_21 = arith.constant 0 : index
    %c0_22 = arith.constant 0 : index
    %27 = vector.load %arg9[%c0_21, %c0_22] : memref<1x1xf32, #tpu.memory_space<vmem>>, vector<1x1xf32>
    %28 = vector.broadcast %27 : vector<1x1xf32> to vector<1x8xf32>
    %29 = arith.addf %26, %28 : vector<1x8xf32>
    %c0_23 = arith.constant 0 : index
    %c0_24 = arith.constant 0 : index
    %30 = vector.load %arg10[%c0_23, %c0_24] : memref<1x8xf32, #tpu.memory_space<vmem>>, vector<1x8xf32>
    tpu.vector_store %arg10[%c0_23, %c0_24], %29 {strides = array<i32>} : memref<1x8xf32, #tpu.memory_space<vmem>>, vector<1x8xf32>,
    return
  }
  func.func @transform_0(%arg0: i32) -> (i32, i32) {
    %c0_i32 = arith.constant 0 : i32
    %c0_i32_0 = arith.constant 0 : i32
    return %arg0, %c0_i32 : i32, i32
  }
  func.func @transform_1(%arg0: i32) -> (i32, i32) {
    %c0_i32 = arith.constant 0 : i32
    %c0_i32_0 = arith.constant 0 : i32
    %c0_i32_1 = arith.constant 0 : i32
    return %c0_i32, %c0_i32_0 : i32, i32
  }
  func.func @transform_2(%arg0: i32) -> (i32, i32) {
    %c0_i32 = arith.constant 0 : i32
    %c0_i32_0 = arith.constant 0 : i32
    %c0_i32_1 = arith.constant 0 : i32
    return %c0_i32, %c0_i32_0 : i32, i32
  }
  func.func @transform_3(%arg0: i32) -> (i32, i32) {
    %c0_i32 = arith.constant 0 : i32
    %c0_i32_0 = arith.constant 0 : i32
    %c0_i32_1 = arith.constant 0 : i32
    return %c0_i32, %c0_i32_0 : i32, i32
  }
  func.func @transform_4(%arg0: i32) -> (i32, i32) {
    %c0_i32 = arith.constant 0 : i32
    %c0_i32_0 = arith.constant 0 : i32
    %c0_i32_1 = arith.constant 0 : i32
    return %c0_i32, %c0_i32_0 : i32, i32
  }
  func.func @transform_5(%arg0: i32) -> (i32, i32) {
    %c0_i32 = arith.constant 0 : i32
    %c0_i32_0 = arith.constant 0 : i32
    %c0_i32_1 = arith.constant 0 : i32
    return %c0_i32, %c0_i32_0 : i32, i32
  }
  func.func @transform_6(%arg0: i32) -> (i32, i32) {
    %c0_i32 = arith.constant 0 : i32
    %c0_i32_0 = arith.constant 0 : i32
    %c0_i32_1 = arith.constant 0 : i32
    return %c0_i32, %c0_i32_0 : i32, i32
  }
  func.func @transform_7(%arg0: i32) -> (i32, i32) {
    %c0_i32 = arith.constant 0 : i32
    %c0_i32_0 = arith.constant 0 : i32
    %c0_i32_1 = arith.constant 0 : i32
    return %c0_i32, %c0_i32_0 : i32, i32
  }
  func.func @transform_8(%arg0: i32) -> (i32, i32) {
    %c0_i32 = arith.constant 0 : i32
    %c0_i32_0 = arith.constant 0 : i32
    %c0_i32_1 = arith.constant 0 : i32
    return %c0_i32, %c0_i32_0 : i32, i32
  }
  func.func @transform_9(%arg0: i32) -> (i32, i32) {
    %c0_i32 = arith.constant 0 : i32
    %c0_i32_0 = arith.constant 0 : i32
    return %c0_i32, %arg0 : i32, i32
  }
}

</mosaic_0001>

<bundles_post_ra>
// kernel: tpu_custom_call.1
= control target key start
LH: loop header
LB: loop body
LE: loop exit
PB: predicated region body
PF: predicated region fallthrough
CT: control target
= control target key end

     0   :  { %s408_s0 = inlined_call_operand.vmem [shape: bf16[8,32], index: 0, kind: input, shape index: {}]   ;;  %s409_s1 = inlined_call_operand.vmem [shape: bf16[32,64], index: 1, kind: input, shape index: {}]   ;;  %s410_s2 = inlined_call_operand.vmem [shape: bf16[1,64], index: 2, kind: input, shape index: {}]   ;;  %s411_s3 = inlined_call_operand.vmem [shape: bf16[64,32], index: 3, kind: input, shape index: {}]   ;;  %s412_s4 = inlined_call_operand.vmem [shape: bf16[1,32], index: 4, kind: input, shape index: {}]   ;;  %s413_s5 = inlined_call_operand.vmem [shape: bf16[32,16], index: 5, kind: input, shape index: {}]   ;;  %s414_s6 = inlined_call_operand.vmem [shape: bf16[1,16], index: 6, kind: input, shape index: {}]   ;;  %s415_s7 = inlined_call_operand.vmem [shape: bf16[1,16], index: 7, kind: input, shape index: {}]   ;;  %s416_s8 = inlined_call_operand.<no memory space> [shape: f32[1,1], index: 8, kind: input, shape index: {}]   ;;  %s417_s9 = inlined_call_operand.hbm [shape: f32[1,8], index: 9, kind: output, shape index: {}]  }
   0x1   :  { %v14_v0 = vstv %s416_s8 }
   0x2   :  { %15 = vst [vmem:[#allocation2] sm:$0x1] %v14_v0 }
   0x3   :  { %v273_v1 = vld [vmem:[%s409_s1 + $0x8] sm:$0xff]  ;;  %v277_v2 = vld [vmem:[%s411_s3 + $0x18] sm:$0xff] }
   0x4   :  { %16 = vsyncpa [#allocation4], 0  ;;  %63 = vmatpush.bf16.msra.mxu0 %v273_v1  ;;  %v272_v3 = vld [vmem:[%s409_s1] sm:$0xff]  ;;  %123 = vmatpush.bf16.msra.mxu1 %v277_v2  ;;  %vm53_vm0 = vcmask 261120   ;;  %v276_v5 = vld [vmem:[%s411_s3 + $0x10] sm:$0xff]  ;;  %vm115_vm1 = vcmask 523264  }
   0x5   :  { %v36_v4 = vld [vmem:[%s408_s0] sm:$0xf]  ;;  %v275_v6 = vld [vmem:[%s411_s3 + $0x8] sm:$0xff]  ;;  %v309_v33 = vmov 0   ;;  %vm198_vm2 = vcmask 130048   ;;  %s227_s12 = sshll.u32 %s417_s9, 4  ;;  %s228_s12 = int_to_ptr.hbm [resolvable:$true] %s227_s12 }
   0x6   :  { %v274_v7 = vld [vmem:[%s411_s3] sm:$0xff]  ;;  %v279_v19 = vld [vmem:[%s413_s5 + $0x8] sm:$0xff]  ;;  %282 = vset.pattern.permute.xlu0 %v309_v33  ;;  %vm218_vm3 = vcmask 57344  }
   0x7   :  { %v71_v8 = vld [vmem:[%s410_s2] sm:$0x1]  ;;  %170 = vmatpush.bf16.msra.mxu2 %v279_v19 }
   0x8   :  { %64 = vmatpush.bf16.msra.mxu0 %v272_v3  ;;  %124 = vmatpush.bf16.msra.mxu1 %v276_v5  ;;  %v73_v9 = vpack.i.b16 %v71_v8, %v71_v8  ;;  %v278_v20 = vld [vmem:[%s413_s5] sm:$0xff] }
   0x9   :  { %v133_v21 = vld [vmem:[%s412_s4] sm:$0x1] }
   0xa   :  { %v75_v10 = vperm.slane %v73_v9, 0  ;;  %v135_v22 = vpack.i.b16 %v133_v21, %v133_v21  ;;  %v191_v32 = vld [vmem:[#allocation2] sm:$0x1] }
   0xb   :  { %244 = vmatmul.msk.bf16.vlgmr.msra.gmra.mxu0 %vm53_vm0, %v36_v4  ;;  %171 = vmatpush.bf16.msra.mxu2 %v278_v20  ;;  %v178_v34 = vld [vmem:[%s414_s6] sm:$0x1]  ;;  %s310_s6 = smov [#allocation3]  }
   0xc   :  { %125 = vmatpush.bf16.msra.mxu1 %v275_v6  ;;  %v77_v13 = vunpack.c.l.bf16 %v75_v10  ;;  %v137_v23 = vperm.slane %v135_v22, 0  ;;  %194 = vperm.xlu0 %282, %v191_v32   ;;  %v180_v35 = vpack.i.b16 %v178_v34, %v178_v34  ;;  %v190_v46 = vld [vmem:[%s415_s7] sm:$0x1]  ;;  %s225_s30 = sshll.u32 %s310_s6, 4  ;;  %s226_s30 = int_to_ptr.vmem [resolvable:$true] %s225_s30 }
   0xe   :  { %v139_v26 = vunpack.c.l.bf16 %v137_v23  ;;  %v182_v36 = vperm.slane %v180_v35, 0 }
  0x10   :  { %126 = vmatpush.bf16.msra.mxu1 %v274_v7  ;;  %v184_v39 = vunpack.c.l.bf16 %v182_v36 }
  0x7e   :  { %v195_v47 = vpop.permute.xlu0 %194 }
  0x7f   :  { %v197_v48 = vperm.slane %v195_v47, 0 }
  0x88   :  { %v66_v11 = vpop.f32.mrf.mxu0 }
  0x89   :  { %v70_v12 = vpack.c.bf16 %v66_v11, %v66_v11 }
  0x8b   :  { %v76_v14 = vunpack.c.l.bf16 %v70_v12 }
  0x8d   :  { %v78_v15 = vadd.f32 %v77_v13, %v76_v14 }
  0x8f   :  { %v81_v16 = vmax.f32 %v78_v15, 0.0 }
  0x90   :  { %v68_v17 = vpop.f32.mrf.mxu0 }
  0x91   :  { %v82_v18 = vpack.c.bf16 %v81_v16, %v81_v16 }
  0x93   :  { %261 = vmatmul.msk.bf16.vlgmr.msra.gmra.mxu1 %vm115_vm1, %v82_v18 }
 0x110   :  { %v128_v24 = vpop.f32.mrf.mxu1 }
 0x111   :  { %v132_v25 = vpack.c.bf16 %v128_v24, %v128_v24 }
 0x113   :  { %v138_v27 = vunpack.c.l.bf16 %v132_v25 }
 0x115   :  { %v140_v28 = vadd.f32 %v139_v26, %v138_v27 }
 0x117   :  { %v143_v29 = vmax.f32 %v140_v28, 0.0 }
 0x118   :  { %v130_v30 = vpop.f32.mrf.mxu1 }
 0x119   :  { %v144_v31 = vpack.c.bf16 %v143_v29, %v143_v29 }
 0x11b   :  { %270 = vmatmul.msk.bf16.vlgmr.msra.gmra.mxu2 %vm53_vm0, %v144_v31 }
 0x19e   :  { %v173_v37 = vpop.f32.mrf.mxu2 }
 0x19f   :  { %v177_v38 = vpack.c.bf16 %v173_v37, %v173_v37 }
 0x1a1   :  { %v183_v40 = vunpack.c.l.bf16 %v177_v38 }
 0x1a3   :  { %v185_v41 = vadd.f32 %v184_v39, %v183_v40 }
 0x1a5   :  { %v188_v42 = vmax.f32 %v185_v41, 0.0 }
 0x1a6   :  { %v175_v43 = vpop.f32.mrf.mxu2 }
 0x1a7   :  { %v189_v44 = vpack.c.bf16 %v188_v42, %v188_v42 }
 0x1a9   :  { %v203_v45 = vsel %vm198_vm2, %v189_v44, 0 }
 0x1aa   :  { %212 = vmatpush.bf16.xpose.msra.mxu3 %v203_v45 }
 0x1b1   :  { %271 = vmatmul.msk.bf16.vlgmr.msra.gmra.mxu3 %vm198_vm2, %v190_v46 }
 0x234   :  { %v214_v49 = vpop.f32.mrf.mxu3 }
 0x235   :  { %v215_v50 = vadd.f32 %v214_v49, %v197_v48 }
 0x237   :  { %219 = vst.msk [vmem:[#allocation3] sm:$0x1] %vm218_vm3, %v215_v50 }
 0x238   :  { %230 = dma.vmem_to_hbm [thread:$0]  %s226_s30, 16, %s228_s12, [#allocation4]  }
 0x23c   :  { %v216_v51 = vpop.f32.mrf.mxu3 }
 0x23d   :  { %307 = dma.done.wait [#allocation4], 16  }
 0x23e   :  { %308 = vsyncadd [#allocation4], 4294967280 }
 0x23f   :  { %235 = vsyncpa [#allocation4], 1 }

</bundles_post_ra>
